<compile_context>
chip_gen: v7x
topology: tpu7x:2x2x1
jax: 0.10.0
libtpu: 0.0.40
codegen_flags: <defaults>
</compile_context>

<pallas_src>
import functools
import math

import jax
import jax.numpy as jnp
from jax import lax
from jax.experimental import pallas as pl
from jax.experimental.pallas import tpu as pltpu

# Deterministic parameters straight from the module's __init__.
P1 = 0.00021055145112023832
P2 = 0.0657994674459573
P3 = 3.317174544176429e-06
P4 = 0.07431025643281813
P5 = 0.08732437094329396
P6 = 0.007333800255491885
P7 = 0.0061655100719614575
P8 = 0.03157413109338753

V_FALLBACK = -80.0          # PyTorch module's except-branch voltage

LANE_MULT = 128             # lane-dense column granularity
MAX_COLS = 32 * 1024        # columns per grid step: 131072 states, ~6.3 MiB VMEM
                            # double-buffered (fits default scoped VMEM on all gens)

# v = -80 fallback: rate constants fold to compile-time scalars.
_K1 = P1 * math.exp(P2 * V_FALLBACK)
_K2 = P3 * math.exp(-P4 * V_FALLBACK)
_K3 = P5 * math.exp(P6 * V_FALLBACK)
_K4 = P7 * math.exp(-P8 * V_FALLBACK)


# ------------------------------ Pallas kernel --------------------------------
def _gating_rhs_kernel(v_ref, y_ref, o_ref):
    """All blocks are (8, cols) f32.

    y rows 0-3 hold `a` states, rows 4-7 hold `r` states; v rows i and i+4 hold
    the matching per-state voltage.  Affine form of the RHS:
        dadt = k1 - (k1 + k2) * a        drdt = k4 - (k3 + k4) * r
    Row selection uses an iota mask against scalar literals only, so the kernel
    captures no array constants and issues only full-block loads/stores.
    """
    v = v_ref[...]
    y = y_ref[...]
    is_a = lax.broadcasted_iota(jnp.int32, v.shape, 0) < 4
    # rows 0-3: k_pos = k1 = P1*exp( P2*v), k_neg = k2 = P3*exp(-P4*v)
    # rows 4-7: k_pos = k3 = P5*exp( P6*v), k_neg = k4 = P7*exp(-P8*v)
    k_pos = jnp.where(is_a, P1, P5) * jnp.exp(jnp.where(is_a, P2, P6) * v)
    k_neg = jnp.where(is_a, P3, P7) * jnp.exp(jnp.where(is_a, -P4, -P8) * v)
    o_ref[...] = jnp.where(is_a, k_pos, k_neg) - (k_pos + k_neg) * y


def _pack_geometry(n, max_cols):
    """Columns of the (8, m) slab and the per-grid-step column block."""
    assert max_cols % LANE_MULT == 0, max_cols
    m = max(1, -(-n // 4))                       # ceil(n / 4) columns needed
    m = -(-m // LANE_MULT) * LANE_MULT           # lane-dense (multiple of 128)
    if m > max_cols:                             # split across grid steps
        m = -(-m // max_cols) * max_cols
        cols = max_cols
    else:                                        # whole batch in one grid step
        cols = m
    return m, cols


@functools.partial(jax.jit, static_argnames=("max_cols",))
def gating_rhs_pallas(y, v, *, max_cols=MAX_COLS):
    """Batched gating RHS with explicit voltages.

    y: (N, 2) f32 states [a, r]; v: (N,) f32 voltages -> (N, 2) [dadt, drdt].
    """
    y = jnp.asarray(y, jnp.float32)
    v = jnp.asarray(v, jnp.float32).reshape(-1)
    n = y.shape[0]
    m, cols = _pack_geometry(n, max_cols)
    n_pad = 4 * m

    # Sublane-dense slab packing (one relayout pass; pad/transpose/reshape fuse).
    y_slab = jnp.pad(y, ((0, n_pad - n), (0, 0))).T.reshape(8, m)   # a rows 0-3, r rows 4-7
    v4 = jnp.pad(v, (0, n_pad - n)).reshape(4, m)
    v_slab = jnp.concatenate([v4, v4], axis=0)                      # rows i and i+4 match y rows

    out = pl.pallas_call(
        _gating_rhs_kernel,
        out_shape=jax.ShapeDtypeStruct((8, m), jnp.float32),
        grid=(m // cols,),
        in_specs=[pl.BlockSpec((8, cols), lambda i: (0, i)),
                  pl.BlockSpec((8, cols), lambda i: (0, i))],
        out_specs=pl.BlockSpec((8, cols), lambda i: (0, i)),
        compiler_params=pltpu.CompilerParams(
            dimension_semantics=("parallel",),          # shard column blocks over v7x TCs
            vmem_limit_bytes=32 * 1024 * 1024),         # safe on v5e/v6e/v7x
    )(v_slab, y_slab)

    return out.reshape(2, n_pad).T[:n]


# --------------------------- non-kernel fast paths ----------------------------
def _gating_rhs_const_v(y):
    """v = -80 fallback: rate constants are compile-time scalars; a single fused
    XLA elementwise op is strictly faster than a kernel launch (perf review)."""
    y = jnp.asarray(y, jnp.float32)
    dadt = _K1 - (_K1 + _K2) * y[..., 0]
    drdt = _K4 - (_K3 + _K4) * y[..., 1]
    return jnp.stack([dadt, drdt], axis=-1)


def lambda_rhs_batched(y, v=None, *, max_cols=MAX_COLS):
    """Evaluate the gating ODE RHS for N states at once.

    y: (N, 2) states [a, r]; v: None (module fallback v = -80) or (N,) voltages.
    """
    y = jnp.asarray(y, jnp.float32)
    if v is None:
        return _gating_rhs_const_v(y)
    return gating_rhs_pallas(y, jnp.asarray(v, jnp.float32).reshape(-1),
                             max_cols=max_cols)


def lambda_forward(t, y, v=None):
    """Equivalent of Lambda.forward(t, y): y is (1, 2), returns (2,).

    TODO(synk): set_fixed_form_voltage_protocol / scipy interp1d is host-side
    interpolation with no Pallas equivalent; matching the module's except-branch,
    v = -80 is used unless an explicit voltage is supplied.
    Per the perf review, this N=1 path uses plain fused jnp (kernel launch
    overhead dwarfs 8 bytes of math); the Pallas kernel is `gating_rhs_pallas`.
    """
    del t  # t only feeds the (unset) interp1d voltage interpolator
    y2 = jnp.asarray(y, jnp.float32).reshape(1, 2)
    if v is None:
        return _gating_rhs_const_v(y2).reshape(2)
    v1 = jnp.asarray(v, jnp.float32).reshape(1)
    a, r = y2[0, 0], y2[0, 1]
    k1 = P1 * jnp.exp(P2 * v1)
    k2 = P3 * jnp.exp(-P4 * v1)
    k3 = P5 * jnp.exp(P6 * v1)
    k4 = P7 * jnp.exp(-P8 * v1)
    dadt = k1 * (1.0 - a) - k2 * a
    drdt = -k3 * r + k4 * (1.0 - r)
    return jnp.stack([dadt[0], drdt[0]])


# ------------------------------- reference -----------------------------------
def _reference_batched(y, v):
    y = jnp.asarray(y, jnp.float32)
    v = jnp.asarray(v, jnp.float32)
    k1 = P1 * jnp.exp(P2 * v)
    k2 = P3 * jnp.exp(-P4 * v)
    k3 = P5 * jnp.exp(P6 * v)
    k4 = P7 * jnp.exp(-P8 * v)
    dadt = k1 * (1.0 - y[:, 0]) - k2 * y[:, 0]
    drdt = -k3 * y[:, 1] + k4 * (1.0 - y[:, 1])
    return jnp.stack([dadt, drdt], axis=1)


if __name__ == "__main__":
    key = jax.random.PRNGKey(0)

    # 1) Module-shaped call: y (1, 2), fallback voltage v = -80 (no protocol set).
    y1 = jax.random.uniform(key, (1, 2), dtype=jnp.float32)
    t = jnp.array(0.0, dtype=jnp.float32)
    dydt = lambda_forward(t, y1)
    jax.block_until_ready(dydt)
    ref1 = _reference_batched(y1, jnp.full((1,), V_FALLBACK, jnp.float32))[0]
    assert dydt.shape == (2,), dydt.shape
    assert jnp.allclose(dydt, ref1, rtol=1e-4, atol=1e-6), (dydt, ref1)

    # 2) Batched Pallas kernel, explicit per-state voltages (N=8 -> one (8,128)
    #    block, single grid step).
    kb, kv = jax.random.split(key)
    n = 8
    yb = jax.random.uniform(kb, (n, 2), dtype=jnp.float32)
    vb = jax.random.uniform(kv, (n,), dtype=jnp.float32) * 120.0 - 100.0  # [-100, 20) mV
    out_b = lambda_rhs_batched(yb, vb)
    jax.block_until_ready(out_b)
    ref_b = _reference_batched(yb, vb)
    assert out_b.shape == (n, 2), out_b.shape
    assert jnp.allclose(out_b, ref_b, rtol=1e-4, atol=1e-6), (out_b, ref_b)

    # 3) Exercise the multi-step grid path (small max_cols override so the
    #    column axis splits into several blocks while shapes stay small).
    kc, kd = jax.random.split(kb)
    n2 = 1500
    yc = jax.random.uniform(kc, (n2, 2), dtype=jnp.float32)
    vc = jax.random.uniform(kd, (n2,), dtype=jnp.float32) * 120.0 - 100.0
    out_c = lambda_rhs_batched(yc, vc, max_cols=128)
    jax.block_until_ready(out_c)
    ref_c = _reference_batched(yc, vc)
    assert out_c.shape == (n2, 2), out_c.shape
    assert jnp.allclose(out_c, ref_c, rtol=1e-4, atol=1e-6), (out_c, ref_c)

    print("KERNEL_OK")
</pallas_src>

<mosaic_0001>
module attributes {stable_mosaic.version = 11 : i64} {
  func.func @_gating_rhs_kernel(%arg0: i32, %arg1: memref<8x128xf32, #tpu.memory_space<vmem>>, %arg2: memref<8x128xf32, #tpu.memory_space<vmem>>, %arg3: memref<8x128xf32, #tpu.memory_space<vmem>>) attributes {dimension_semantics = [#tpu.dimension_semantics<parallel>], iteration_bounds = array<i64: 1>, scalar_prefetch = 0 : i64, scratch_operands = 0 : i64, tpu.core_type = #tpu.core_type<tc>, window_params = [{transform_indices = @transform_0, window_bounds = array<i64: 8, 128>}, {transform_indices = @transform_1, window_bounds = array<i64: 8, 128>}, {transform_indices = @transform_2, window_bounds = array<i64: 8, 128>}]} {
    %c0 = arith.constant 0 : index
    %c0_0 = arith.constant 0 : index
    %0 = vector.load %arg1[%c0, %c0_0] : memref<8x128xf32, #tpu.memory_space<vmem>>, vector<8x128xf32>
    %c0_1 = arith.constant 0 : index
    %c0_2 = arith.constant 0 : index
    %1 = vector.load %arg2[%c0_1, %c0_2] : memref<8x128xf32, #tpu.memory_space<vmem>>, vector<8x128xf32>
    %2 = tpu.iota {dimensions = array<i32: 0>} : vector<8x128xi32>
    %c4_i32 = arith.constant 4 : i32
    %3 = vector.broadcast %c4_i32 : i32 to vector<8x128xi32>
    %4 = arith.cmpi slt, %2, %3 : vector<8x128xi32>
    %cst = arith.constant 2.10551458E-4 : f32
    %cst_3 = arith.constant 0.0873243734 : f32
    %5 = vector.broadcast %cst : f32 to vector<8x128xf32>
    %6 = vector.broadcast %cst_3 : f32 to vector<8x128xf32>
    %7 = arith.select %4, %5, %6 : vector<8x128xi1>, vector<8x128xf32>
    %cst_4 = arith.constant 0.0657994673 : f32
    %cst_5 = arith.constant 7.333800e-03 : f32
    %8 = vector.broadcast %cst_4 : f32 to vector<8x128xf32>
    %9 = vector.broadcast %cst_5 : f32 to vector<8x128xf32>
    %10 = arith.select %4, %8, %9 : vector<8x128xi1>, vector<8x128xf32>
    %11 = arith.mulf %10, %0 : vector<8x128xf32>
    %12 = math.exp %11 : vector<8x128xf32>
    %13 = arith.mulf %7, %12 : vector<8x128xf32>
    %cst_6 = arith.constant 3.31717456E-6 : f32
    %cst_7 = arith.constant 6.165510e-03 : f32
    %14 = vector.broadcast %cst_6 : f32 to vector<8x128xf32>
    %15 = vector.broadcast %cst_7 : f32 to vector<8x128xf32>
    %16 = arith.select %4, %14, %15 : vector<8x128xi1>, vector<8x128xf32>
    %cst_8 = arith.constant -0.074310258 : f32
    %cst_9 = arith.constant -0.0315741301 : f32
    %17 = vector.broadcast %cst_8 : f32 to vector<8x128xf32>
    %18 = vector.broadcast %cst_9 : f32 to vector<8x128xf32>
    %19 = arith.select %4, %17, %18 : vector<8x128xi1>, vector<8x128xf32>
    %20 = arith.mulf %19, %0 : vector<8x128xf32>
    %21 = math.exp %20 : vector<8x128xf32>
    %22 = arith.mulf %16, %21 : vector<8x128xf32>
    %23 = arith.select %4, %13, %22 : vector<8x128xi1>, vector<8x128xf32>
    %24 = arith.addf %13, %22 : vector<8x128xf32>
    %25 = arith.mulf %24, %1 : vector<8x128xf32>
    %26 = arith.subf %23, %25 : vector<8x128xf32>
    %c0_10 = arith.constant 0 : index
    %c0_11 = arith.constant 0 : index
    %27 = vector.load %arg3[%c0_10, %c0_11] : memref<8x128xf32, #tpu.memory_space<vmem>>, vector<8x128xf32>
    tpu.vector_store %arg3[%c0_10, %c0_11], %26 {strides = array<i32>} : memref<8x128xf32, #tpu.memory_space<vmem>>, vector<8x128xf32>,
    return
  }
  func.func @transform_0(%arg0: i32) -> (i32, i32) {
    %c0_i32 = arith.constant 0 : i32
    %c0_i32_0 = arith.constant 0 : i32
    return %c0_i32, %arg0 : i32, i32
  }
  func.func @transform_1(%arg0: i32) -> (i32, i32) {
    %c0_i32 = arith.constant 0 : i32
    %c0_i32_0 = arith.constant 0 : i32
    return %c0_i32, %arg0 : i32, i32
  }
  func.func @transform_2(%arg0: i32) -> (i32, i32) {
    %c0_i32 = arith.constant 0 : i32
    %c0_i32_0 = arith.constant 0 : i32
    return %c0_i32, %arg0 : i32, i32
  }
}

</mosaic_0001>

<bundles_post_ra>
// kernel: gating_rhs_pallas.1
= control target key start
LH: loop header
LB: loop body
LE: loop exit
PB: predicated region body
PF: predicated region fallthrough
CT: control target
= control target key end

     0   :  { %v13_v0 = vlaneseq  ;;  %v45_v3 = vmov 0.0073338   ;;  %v46_v6 = vmov -0.03157413   ;;  %v47_v11 = vmov 0.08732437   ;;  %s78_s0 = inlined_call_operand.vmem [shape: f32[8,128], index: 0, kind: input, shape index: {}]   ;;  %s79_s1 = inlined_call_operand.vmem [shape: f32[8,128], index: 1, kind: input, shape index: {}]   ;;  %s80_s2 = inlined_call_operand.vmem [shape: f32[8,128], index: 2, kind: output, shape index: {}]  }
   0x1   :  { %v11_v2 = vld [vmem:[%s78_s0] sm:$0xff]  ;;  %v48_v13 = vmov 0.00616551  }
   0x2   :  { %v14_v1 = vshrl.u32 %v13_v0, 7  ;;  %v12_v19 = vld [vmem:[%s79_s1] sm:$0xff] }
   0x4   :  { %vm15_vm0 = vcmp.lt.s32.totalorder %v14_v1, 4 }
   0x5   :  { %v17_v4 = vsel %vm15_vm0, 0.06579947, %v45_v3  ;;  %v23_v7 = vsel %vm15_vm0, -0.07431026, %v46_v6  ;;  %v16_v12 = vsel %vm15_vm0, 0.00021055146, %v47_v11 }
   0x6   :  { %v18_v5 = vmul.f32 %v17_v4, %v11_v2  ;;  %v24_v8 = vmul.f32 %v23_v7, %v11_v2  ;;  %v22_v14 = vsel %vm15_vm0, 3.3171746e-06, %v48_v13 }
   0x8   :  { %v19_v9 = vmul.f32 1.442695, %v18_v5  ;;  %v25_v10 = vmul.f32 1.442695, %v24_v8 }
   0xa   :  { %41 = vpow2.f32 %v19_v9 }
   0xb   :  { %43 = vpow2.f32 %v25_v10 }
  0x14   :  { %v42_v15 = vpop.eup %41 }
  0x15   :  { %v44_v16 = vpop.eup %43  ;;  %v21_v17 = vmul.f32 %v42_v15, %v16_v12 }
  0x16   :  { %v27_v18 = vmul.f32 %v44_v16, %v22_v14 }
  0x18   :  { %v29_v20 = vadd.f32 %v27_v18, %v21_v17  ;;  %v28_v21 = vsel %vm15_vm0, %v21_v17, %v27_v18 }
  0x1a   :  { %v30_v22 = vmul.f32 %v29_v20, %v12_v19 }
  0x1c   :  { %v31_v23 = vsub.f32 %v28_v21, %v30_v22 }
  0x1e   :  { %32 = vst [vmem:[%s80_s2] sm:$0xff] %v31_v23 }

</bundles_post_ra>
